<compile_context>
chip_gen: v5e
topology: v5e:2x2
jax: 0.10.0
libtpu: 0.0.40
codegen_flags: <defaults>
</compile_context>

<pallas_src>
import jax
import jax.numpy as jnp
from jax.experimental import pallas as pl
from jax.experimental.pallas import tpu as pltpu

# Model / test dimensions (ResNetEncoder1D(input_dim, embedding_dim, cnn_filters))
INPUT_DIM = 4
CNN_FILTERS = 8
EMBED_DIM = 32
SEQ_LEN = 16
BATCH = 2
BN_EPS = 1e-5

# Uniform padded channel width (max of all channel counts in the network).
CW = max(INPUT_DIM, CNN_FILTERS, 2 * CNN_FILTERS, EMBED_DIM)          # 32
# Per-block packed slab: 3 conv1 taps + 3 conv2 taps + 1x1 shortcut (each CWxCW)
# + 3 bias rows padded to 8 for sublane alignment.
BLOCK_ROWS = 7 * CW + 8                                                # 232


# ---------------------------------------------------------------------------
# In-kernel building blocks (operate on VMEM values / refs)
# ---------------------------------------------------------------------------
def _residual_block(x, w_ref, base, seg_len):
    """ResidualBlock1D (BN folded, eval mode) on a (N, CW) slab; N = bpb*seg_len.

    Weight slab layout (rows, all offsets relative to `base`, 8-aligned):
      [0,   3*CW)   conv1 taps k=0,1,2   (each (CW, CW), zero-padded)
      [3CW, 6*CW)   conv2 taps k=0,1,2
      [6CW, 7*CW)   1x1 shortcut weight
      [7CW, 7CW+3)  bias rows: b1, b2, bs (zero-padded lanes)
    """
    n = x.shape[0]
    rows = jax.lax.broadcasted_iota(jnp.int32, (n, 1), 0)
    pos = jnp.bitwise_and(rows, seg_len - 1)            # seg_len is a power of two
    mask_prev = (pos != 0).astype(x.dtype)              # zero tap crossing elem start
    mask_next = (pos != seg_len - 1).astype(x.dtype)    # zero tap crossing elem end

    bias = w_ref[pl.ds(base + 7 * CW, 3), :]            # (3, CW): b1, b2, bs

    def conv3(v, tap0, b_row):
        # Conv1d(kernel=3, stride=1, padding=1); halo taps via sublane roll (XLU),
        # masked at batch-element boundaries (== PyTorch zero padding).
        prev = pltpu.roll(v, 1, axis=0) * mask_prev          # v[l-1]
        nxt = pltpu.roll(v, n - 1, axis=0) * mask_next       # v[l+1]
        y = (jnp.dot(prev, w_ref[pl.ds(base + tap0, CW), :],
                     preferred_element_type=jnp.float32)
             + jnp.dot(v, w_ref[pl.ds(base + tap0 + CW, CW), :],
                       preferred_element_type=jnp.float32)
             + jnp.dot(nxt, w_ref[pl.ds(base + tap0 + 2 * CW, CW), :],
                       preferred_element_type=jnp.float32))
        return y + bias[b_row:b_row + 1, :]

    h = jnp.maximum(conv3(x, 0, 0), 0.0)                 # relu(bn1(conv1(x)))
    h = conv3(h, 3 * CW, 1)                              # bn2(conv2(h))
    sc = jnp.dot(x, w_ref[pl.ds(base + 6 * CW, CW), :],  # 1x1 shortcut + BN
                 preferred_element_type=jnp.float32) + bias[2:3, :]
    return jnp.maximum(h + sc, 0.0)


def _maxpool2(h, scratch_ref):
    """MaxPool1d(2): pairwise max via roll, then one stride-2 sublane read."""
    n = h.shape[0]
    scratch_ref[...] = jnp.maximum(h, pltpu.roll(h, n - 1, axis=0))  # max(h[l], h[l+1])
    return scratch_ref[pl.ds(0, n // 2, stride=2), :]                # even rows only


def _avgpool_segments(h, seg_len, scratch_ref):
    """AdaptiveAvgPool1d(1): per-element mean over seg_len rows.

    Roll-add tree (log2(seg_len) XLU rolls) builds running sums so that the row
    at each segment start holds the full segment sum; one stride-seg_len read
    extracts them.  seg_len is a power of two and segments never wrap.
    """
    n = h.shape[0]
    s = h
    shift = 1
    while shift < seg_len:
        s = s + pltpu.roll(s, n - shift, axis=0)         # s[l] += s[l + shift]
        shift *= 2
    scratch_ref[...] = s
    starts = scratch_ref[pl.ds(0, n // seg_len, stride=seg_len), :]  # (bpb, CW)
    return starts * (1.0 / seg_len)


# ---------------------------------------------------------------------------
# Pallas wrapper: whole (sub-)batch per grid step
# ---------------------------------------------------------------------------
def resnet_encoder_1d(x, w_slab, *, num_blocks=1):
    """x: (B, L, input_dim) float32 -> (B, embedding_dim) float32."""
    B, L, C0 = x.shape
    assert L % 4 == 0 and (L & (L - 1)) == 0, "kernel assumes power-of-two L"
    # TODO(synk): general (odd / non power-of-two) L needs explicit floor-trim
    # masks to exactly match PyTorch MaxPool1d(2) length flooring.
    assert B % num_blocks == 0
    bpb = B // num_blocks                     # batch elements per grid step

    def kernel(x_ref, w_ref, out_ref, p1_ref, p2_ref, p3_ref):
        h = x_ref[...]                                            # (bpb*L, CW)
        h = _residual_block(h, w_ref, 0 * BLOCK_ROWS, L)
        h = _maxpool2(h, p1_ref)                                  # (bpb*L/2, CW)
        h = _residual_block(h, w_ref, 1 * BLOCK_ROWS, L // 2)
        h = _maxpool2(h, p2_ref)                                  # (bpb*L/4, CW)
        h = _residual_block(h, w_ref, 2 * BLOCK_ROWS, L // 4)
        pooled = _avgpool_segments(h, L // 4, p3_ref)             # (bpb, CW)
        out_ref[0] = pooled[:, 0:EMBED_DIM]

    # Fold batch onto the sublane axis and pad channels to the uniform lane width
    # (both are cheap one-time XLA ops in the wrapper).
    xf = jnp.pad(x.reshape(B * L, C0), ((0, 0), (0, CW - C0)))

    out = pl.pallas_call(
        kernel,
        out_shape=jax.ShapeDtypeStruct((num_blocks, bpb, EMBED_DIM), jnp.float32),
        grid=(num_blocks,),
        in_specs=[
            pl.BlockSpec((bpb * L, CW), lambda i: (i, 0)),
            pl.BlockSpec(w_slab.shape, lambda i: (0, 0)),   # same full slab each step
        ],
        out_specs=pl.BlockSpec((1, bpb, EMBED_DIM), lambda i: (i, 0, 0)),
        scratch_shapes=[
            pltpu.VMEM((bpb * L, CW), jnp.float32),          # pool-1 staging
            pltpu.VMEM((bpb * L // 2, CW), jnp.float32),     # pool-2 staging
            pltpu.VMEM((bpb * L // 4, CW), jnp.float32),     # avg-pool staging
        ],
        compiler_params=pltpu.CompilerParams(
            dimension_semantics=(("arbitrary",) if num_blocks == 1
                                 else ("parallel",))),
    )(xf, w_slab)
    return out.reshape(B, EMBED_DIM)


# ---------------------------------------------------------------------------
# Deterministic parameter init (PyTorch layouts) + BN folding / packing glue
# ---------------------------------------------------------------------------
def _init_bn(key, c):
    ka, kb, kc, kd = jax.random.split(key, 4)
    gamma = 1.0 + 0.1 * jax.random.normal(ka, (c,), jnp.float32)
    beta = 0.1 * jax.random.normal(kb, (c,), jnp.float32)
    mean = 0.1 * jax.random.normal(kc, (c,), jnp.float32)
    var = 0.5 + jax.random.uniform(kd, (c,), jnp.float32)
    return gamma, beta, mean, var


def init_raw_params(key):
    dims = [(INPUT_DIM, CNN_FILTERS),
            (CNN_FILTERS, 2 * CNN_FILTERS),
            (2 * CNN_FILTERS, EMBED_DIM)]
    blocks = []
    for cin, cout in dims:
        key, kw1, kb1, kn1, kw2, kb2, kn2, kws, kbs, kns = jax.random.split(key, 10)
        blocks.append(dict(
            w1=0.3 * jax.random.normal(kw1, (cout, cin, 3), jnp.float32),
            b1=0.05 * jax.random.normal(kb1, (cout,), jnp.float32),
            bn1=_init_bn(kn1, cout),
            w2=0.3 * jax.random.normal(kw2, (cout, cout, 3), jnp.float32),
            b2=0.05 * jax.random.normal(kb2, (cout,), jnp.float32),
            bn2=_init_bn(kn2, cout),
            ws=0.3 * jax.random.normal(kws, (cout, cin, 1), jnp.float32),
            bs=0.05 * jax.random.normal(kbs, (cout,), jnp.float32),
            bns=_init_bn(kns, cout),
        ))
    return blocks


def _fold_bn(w, b, stats):
    gamma, beta, mean, var = stats
    s = gamma / jnp.sqrt(var + BN_EPS)              # per out-channel scale
    w_f = w * s[:, None, None]                      # (Cout, Cin, K)
    b_f = b * s + (beta - mean * s)
    return w_f, b_f


def _pad_to(a, rows, cols):
    return jnp.pad(a, ((0, rows - a.shape[0]), (0, cols - a.shape[1])))


def fold_params(raw_blocks):
    """Fold eval-mode BN into convs and pack ALL blocks into one (696, 32) slab.

    Per block (rows x CW lanes, zero-padded to uniform CW channel width):
      [0, CW)*3       conv1 taps k=0,1,2   (input-ch rows, output-ch lanes)
      [3CW, 6CW)      conv2 taps k=0,1,2
      [6CW, 7CW)      1x1 shortcut weight
      [7CW, 7CW+3)    bias rows b1, b2, bs   (block padded to BLOCK_ROWS rows)
    """
    slabs = []
    for p in raw_blocks:
        w1f, b1f = _fold_bn(p["w1"], p["b1"], p["bn1"])   # (Cout, Cin, 3)
        w2f, b2f = _fold_bn(p["w2"], p["b2"], p["bn2"])   # (Cout, Cout, 3)
        wsf, bsf = _fold_bn(p["ws"], p["bs"], p["bns"])   # (Cout, Cin, 1)
        parts = []
        for k in range(3):
            parts.append(_pad_to(w1f[:, :, k].T, CW, CW))   # (Cin, Cout) -> (CW, CW)
        for k in range(3):
            parts.append(_pad_to(w2f[:, :, k].T, CW, CW))
        parts.append(_pad_to(wsf[:, :, 0].T, CW, CW))
        bias = jnp.stack([b1f, b2f, bsf], axis=0)           # (3, Cout)
        parts.append(_pad_to(bias, 8, CW))                  # 8-row aligned tail
        slabs.append(jnp.concatenate(parts, axis=0))        # (BLOCK_ROWS, CW)
    return jnp.concatenate(slabs, axis=0)                   # (3*BLOCK_ROWS, CW)


# ---------------------------------------------------------------------------
# Pure-JAX reference (PyTorch NCL semantics, explicit eval-mode BN)
# ---------------------------------------------------------------------------
def torch_reference(x, raw_blocks):
    def conv1d(h, w, b, pad):
        out = jax.lax.conv_general_dilated(
            h, w, window_strides=(1,), padding=[(pad, pad)],
            dimension_numbers=("NCH", "OIH", "NCH"))
        return out + b[None, :, None]

    def bn(h, stats):
        gamma, beta, mean, var = stats
        inv = gamma / jnp.sqrt(var + BN_EPS)
        return inv[None, :, None] * (h - mean[None, :, None]) + beta[None, :, None]

    def block(h, p):
        o = jax.nn.relu(bn(conv1d(h, p["w1"], p["b1"], 1), p["bn1"]))
        o = bn(conv1d(o, p["w2"], p["b2"], 1), p["bn2"])
        sc = bn(conv1d(h, p["ws"], p["bs"], 0), p["bns"])
        return jax.nn.relu(o + sc)

    def maxpool(h):
        B, C, L = h.shape
        return h.reshape(B, C, L // 2, 2).max(axis=-1)

    h = jnp.transpose(x, (0, 2, 1))          # x.permute(0, 2, 1)
    h = maxpool(block(h, raw_blocks[0]))
    h = maxpool(block(h, raw_blocks[1]))
    h = block(h, raw_blocks[2])
    return h.mean(axis=-1)                   # AdaptiveAvgPool1d(1) + squeeze(-1)


if __name__ == "__main__":
    key = jax.random.PRNGKey(0)
    kx, kp = jax.random.split(key)
    x = jax.random.normal(kx, (BATCH, SEQ_LEN, INPUT_DIM), dtype=jnp.float32)

    raw = init_raw_params(kp)
    w_slab = fold_params(raw)

    out = jax.block_until_ready(resnet_encoder_1d(x, w_slab))
    assert out.shape == (BATCH, EMBED_DIM), out.shape

    ref = torch_reference(x, raw)
    err = float(jnp.max(jnp.abs(out - ref)))
    if err > 1e-4:
        raise AssertionError(f"Pallas kernel mismatch vs reference, max abs err = {err}")
    print("KERNEL_OK")
</pallas_src>

<mosaic_0001>
module attributes {stable_mosaic.version = 11 : i64} {
  func.func @kernel(%arg0: i32, %arg1: memref<32x32xf32, #tpu.memory_space<vmem>>, %arg2: memref<696x32xf32, #tpu.memory_space<vmem>>, %arg3: memref<1x2x32xf32, #tpu.memory_space<vmem>>, %arg4: memref<32x32xf32, #tpu.memory_space<vmem>>, %arg5: memref<16x32xf32, #tpu.memory_space<vmem>>, %arg6: memref<8x32xf32, #tpu.memory_space<vmem>>) attributes {dimension_semantics = [#tpu.dimension_semantics<arbitrary>], iteration_bounds = array<i64: 1>, scalar_prefetch = 0 : i64, scratch_operands = 3 : i64, tpu.core_type = #tpu.core_type<tc>, window_params = [{transform_indices = @transform_0, window_bounds = array<i64: 32, 32>}, {pipeline_mode = #tpu.pipeline_mode<synchronous>, transform_indices = @transform_1, window_bounds = array<i64: 696, 32>}, {transform_indices = @transform_2, window_bounds = array<i64: 1, 2, 32>}]} {
    %c0 = arith.constant 0 : index
    %c0_0 = arith.constant 0 : index
    %0 = vector.load %arg1[%c0, %c0_0] : memref<32x32xf32, #tpu.memory_space<vmem>>, vector<32x32xf32>
    %1 = tpu.iota {dimensions = array<i32: 0>} : vector<32x1xi32>
    %c15_i32 = arith.constant 15 : i32
    %2 = vector.broadcast %c15_i32 : i32 to vector<32x1xi32>
    %3 = arith.andi %1, %2 : vector<32x1xi32>
    %c0_i32 = arith.constant 0 : i32
    %4 = vector.broadcast %c0_i32 : i32 to vector<32x1xi32>
    %5 = arith.cmpi ne, %3, %4 : vector<32x1xi32>
    %6 = arith.extui %5 : vector<32x1xi1> to vector<32x1xi32>
    %7 = arith.sitofp %6 : vector<32x1xi32> to vector<32x1xf32>
    %c15_i32_1 = arith.constant 15 : i32
    %8 = vector.broadcast %c15_i32_1 : i32 to vector<32x1xi32>
    %9 = arith.cmpi ne, %3, %8 : vector<32x1xi32>
    %10 = arith.extui %9 : vector<32x1xi1> to vector<32x1xi32>
    %11 = arith.sitofp %10 : vector<32x1xi32> to vector<32x1xf32>
    %c224 = arith.constant 224 : index
    %c0_2 = arith.constant 0 : index
    %12 = vector.load %arg2[%c224, %c0_2] : memref<696x32xf32, #tpu.memory_space<vmem>>, vector<3x32xf32>
    %c1_i32 = arith.constant 1 : i32
    %13 = tpu.dynamic_rotate %0 by %c1_i32 dim 0 : vector<32x32xf32>, i32 -> vector<32x32xf32>
    %14 = vector.broadcast %7 : vector<32x1xf32> to vector<32x32xf32>
    %15 = arith.mulf %13, %14 : vector<32x32xf32>
    %c31_i32 = arith.constant 31 : i32
    %16 = tpu.dynamic_rotate %0 by %c31_i32 dim 0 : vector<32x32xf32>, i32 -> vector<32x32xf32>
    %17 = vector.broadcast %11 : vector<32x1xf32> to vector<32x32xf32>
    %18 = arith.mulf %16, %17 : vector<32x32xf32>
    %c0_3 = arith.constant 0 : index
    %c0_4 = arith.constant 0 : index
    %19 = vector.load %arg2[%c0_3, %c0_4] : memref<696x32xf32, #tpu.memory_space<vmem>>, vector<32x32xf32>
    %cst = arith.constant dense<0.000000e+00> : vector<32x32xf32>
    %20 = tpu.matmul %15, %19, %cst {dimension_numbers = #tpu.dot_dimension_numbers<[1], [0], [0], [1], [0, 0, 1, 1], [], []>} : vector<32x32xf32>, vector<32x32xf32>, vector<32x32xf32> -> vector<32x32xf32>
    %c32 = arith.constant 32 : index
    %c0_5 = arith.constant 0 : index
    %21 = vector.load %arg2[%c32, %c0_5] : memref<696x32xf32, #tpu.memory_space<vmem>>, vector<32x32xf32>
    %cst_6 = arith.constant dense<0.000000e+00> : vector<32x32xf32>
    %22 = tpu.matmul %0, %21, %cst_6 {dimension_numbers = #tpu.dot_dimension_numbers<[1], [0], [0], [1], [0, 0, 1, 1], [], []>} : vector<32x32xf32>, vector<32x32xf32>, vector<32x32xf32> -> vector<32x32xf32>
    %23 = arith.addf %20, %22 : vector<32x32xf32>
    %c64 = arith.constant 64 : index
    %c0_7 = arith.constant 0 : index
    %24 = vector.load %arg2[%c64, %c0_7] : memref<696x32xf32, #tpu.memory_space<vmem>>, vector<32x32xf32>
    %cst_8 = arith.constant dense<0.000000e+00> : vector<32x32xf32>
    %25 = tpu.matmul %18, %24, %cst_8 {dimension_numbers = #tpu.dot_dimension_numbers<[1], [0], [0], [1], [0, 0, 1, 1], [], []>} : vector<32x32xf32>, vector<32x32xf32>, vector<32x32xf32> -> vector<32x32xf32>
    %26 = arith.addf %23, %25 : vector<32x32xf32>
    %27 = vector.extract_strided_slice %12 {offsets = [0, 0], sizes = [1, 32], strides = [1, 1]} : vector<3x32xf32> to vector<1x32xf32>
    %28 = vector.broadcast %27 : vector<1x32xf32> to vector<32x32xf32>
    %29 = arith.addf %26, %28 : vector<32x32xf32>
    %cst_9 = arith.constant 0.000000e+00 : f32
    %30 = vector.broadcast %cst_9 : f32 to vector<32x32xf32>
    %31 = arith.maximumf %29, %30 : vector<32x32xf32>
    %c1_i32_10 = arith.constant 1 : i32
    %32 = tpu.dynamic_rotate %31 by %c1_i32_10 dim 0 : vector<32x32xf32>, i32 -> vector<32x32xf32>
    %33 = vector.broadcast %7 : vector<32x1xf32> to vector<32x32xf32>
    %34 = arith.mulf %32, %33 : vector<32x32xf32>
    %c31_i32_11 = arith.constant 31 : i32
    %35 = tpu.dynamic_rotate %31 by %c31_i32_11 dim 0 : vector<32x32xf32>, i32 -> vector<32x32xf32>
    %36 = vector.broadcast %11 : vector<32x1xf32> to vector<32x32xf32>
    %37 = arith.mulf %35, %36 : vector<32x32xf32>
    %c96 = arith.constant 96 : index
    %c0_12 = arith.constant 0 : index
    %38 = vector.load %arg2[%c96, %c0_12] : memref<696x32xf32, #tpu.memory_space<vmem>>, vector<32x32xf32>
    %cst_13 = arith.constant dense<0.000000e+00> : vector<32x32xf32>
    %39 = tpu.matmul %34, %38, %cst_13 {dimension_numbers = #tpu.dot_dimension_numbers<[1], [0], [0], [1], [0, 0, 1, 1], [], []>} : vector<32x32xf32>, vector<32x32xf32>, vector<32x32xf32> -> vector<32x32xf32>
    %c128 = arith.constant 128 : index
    %c0_14 = arith.constant 0 : index
    %40 = vector.load %arg2[%c128, %c0_14] : memref<696x32xf32, #tpu.memory_space<vmem>>, vector<32x32xf32>
    %cst_15 = arith.constant dense<0.000000e+00> : vector<32x32xf32>
    %41 = tpu.matmul %31, %40, %cst_15 {dimension_numbers = #tpu.dot_dimension_numbers<[1], [0], [0], [1], [0, 0, 1, 1], [], []>} : vector<32x32xf32>, vector<32x32xf32>, vector<32x32xf32> -> vector<32x32xf32>
    %42 = arith.addf %39, %41 : vector<32x32xf32>
    %c160 = arith.constant 160 : index
    %c0_16 = arith.constant 0 : index
    %43 = vector.load %arg2[%c160, %c0_16] : memref<696x32xf32, #tpu.memory_space<vmem>>, vector<32x32xf32>
    %cst_17 = arith.constant dense<0.000000e+00> : vector<32x32xf32>
    %44 = tpu.matmul %37, %43, %cst_17 {dimension_numbers = #tpu.dot_dimension_numbers<[1], [0], [0], [1], [0, 0, 1, 1], [], []>} : vector<32x32xf32>, vector<32x32xf32>, vector<32x32xf32> -> vector<32x32xf32>
    %45 = arith.addf %42, %44 : vector<32x32xf32>
    %46 = vector.extract_strided_slice %12 {offsets = [1, 0], sizes = [1, 32], strides = [1, 1]} : vector<3x32xf32> to vector<1x32xf32>
    %47 = vector.broadcast %46 : vector<1x32xf32> to vector<32x32xf32>
    %48 = arith.addf %45, %47 : vector<32x32xf32>
    %c192 = arith.constant 192 : index
    %c0_18 = arith.constant 0 : index
    %49 = vector.load %arg2[%c192, %c0_18] : memref<696x32xf32, #tpu.memory_space<vmem>>, vector<32x32xf32>
    %cst_19 = arith.constant dense<0.000000e+00> : vector<32x32xf32>
    %50 = tpu.matmul %0, %49, %cst_19 {dimension_numbers = #tpu.dot_dimension_numbers<[1], [0], [0], [1], [0, 0, 1, 1], [], []>} : vector<32x32xf32>, vector<32x32xf32>, vector<32x32xf32> -> vector<32x32xf32>
    %51 = vector.extract_strided_slice %12 {offsets = [2, 0], sizes = [1, 32], strides = [1, 1]} : vector<3x32xf32> to vector<1x32xf32>
    %52 = vector.broadcast %51 : vector<1x32xf32> to vector<32x32xf32>
    %53 = arith.addf %50, %52 : vector<32x32xf32>
    %54 = arith.addf %48, %53 : vector<32x32xf32>
    %cst_20 = arith.constant 0.000000e+00 : f32
    %55 = vector.broadcast %cst_20 : f32 to vector<32x32xf32>
    %56 = arith.maximumf %54, %55 : vector<32x32xf32>
    %c31_i32_21 = arith.constant 31 : i32
    %57 = tpu.dynamic_rotate %56 by %c31_i32_21 dim 0 : vector<32x32xf32>, i32 -> vector<32x32xf32>
    %58 = arith.maximumf %56, %57 : vector<32x32xf32>
    %c0_22 = arith.constant 0 : index
    %c0_23 = arith.constant 0 : index
    %59 = vector.load %arg4[%c0_22, %c0_23] : memref<32x32xf32, #tpu.memory_space<vmem>>, vector<32x32xf32>
    tpu.vector_store %arg4[%c0_22, %c0_23], %58 {strides = array<i32>} : memref<32x32xf32, #tpu.memory_space<vmem>>, vector<32x32xf32>,
    %c0_24 = arith.constant 0 : index
    %c0_25 = arith.constant 0 : index
    %60 = tpu.strided_load %arg4[%c0_24, %c0_25] {strides = array<i32: 2, 1>} : memref<32x32xf32, #tpu.memory_space<vmem>>, vector<16x32xf32>
    %61 = tpu.iota {dimensions = array<i32: 0>} : vector<16x1xi32>
    %c7_i32 = arith.constant 7 : i32
    %62 = vector.broadcast %c7_i32 : i32 to vector<16x1xi32>
    %63 = arith.andi %61, %62 : vector<16x1xi32>
    %c0_i32_26 = arith.constant 0 : i32
    %64 = vector.broadcast %c0_i32_26 : i32 to vector<16x1xi32>
    %65 = arith.cmpi ne, %63, %64 : vector<16x1xi32>
    %66 = arith.extui %65 : vector<16x1xi1> to vector<16x1xi32>
    %67 = arith.sitofp %66 : vector<16x1xi32> to vector<16x1xf32>
    %c7_i32_27 = arith.constant 7 : i32
    %68 = vector.broadcast %c7_i32_27 : i32 to vector<16x1xi32>
    %69 = arith.cmpi ne, %63, %68 : vector<16x1xi32>
    %70 = arith.extui %69 : vector<16x1xi1> to vector<16x1xi32>
    %71 = arith.sitofp %70 : vector<16x1xi32> to vector<16x1xf32>
    %c456 = arith.constant 456 : index
    %c0_28 = arith.constant 0 : index
    %72 = vector.load %arg2[%c456, %c0_28] : memref<696x32xf32, #tpu.memory_space<vmem>>, vector<3x32xf32>
    %c1_i32_29 = arith.constant 1 : i32
    %73 = tpu.dynamic_rotate %60 by %c1_i32_29 dim 0 : vector<16x32xf32>, i32 -> vector<16x32xf32>
    %74 = vector.broadcast %67 : vector<16x1xf32> to vector<16x32xf32>
    %75 = arith.mulf %73, %74 : vector<16x32xf32>
    %c15_i32_30 = arith.constant 15 : i32
    %76 = tpu.dynamic_rotate %60 by %c15_i32_30 dim 0 : vector<16x32xf32>, i32 -> vector<16x32xf32>
    %77 = vector.broadcast %71 : vector<16x1xf32> to vector<16x32xf32>
    %78 = arith.mulf %76, %77 : vector<16x32xf32>
    %c232 = arith.constant 232 : index
    %c0_31 = arith.constant 0 : index
    %79 = vector.load %arg2[%c232, %c0_31] : memref<696x32xf32, #tpu.memory_space<vmem>>, vector<32x32xf32>
    %cst_32 = arith.constant dense<0.000000e+00> : vector<16x32xf32>
    %80 = tpu.matmul %75, %79, %cst_32 {dimension_numbers = #tpu.dot_dimension_numbers<[1], [0], [0], [1], [0, 0, 1, 1], [], []>} : vector<16x32xf32>, vector<32x32xf32>, vector<16x32xf32> -> vector<16x32xf32>
    %c264 = arith.constant 264 : index
    %c0_33 = arith.constant 0 : index
    %81 = vector.load %arg2[%c264, %c0_33] : memref<696x32xf32, #tpu.memory_space<vmem>>, vector<32x32xf32>
    %cst_34 = arith.constant dense<0.000000e+00> : vector<16x32xf32>
    %82 = tpu.matmul %60, %81, %cst_34 {dimension_numbers = #tpu.dot_dimension_numbers<[1], [0], [0], [1], [0, 0, 1, 1], [], []>} : vector<16x32xf32>, vector<32x32xf32>, vector<16x32xf32> -> vector<16x32xf32>
    %83 = arith.addf %80, %82 : vector<16x32xf32>
    %c296 = arith.constant 296 : index
    %c0_35 = arith.constant 0 : index
    %84 = vector.load %arg2[%c296, %c0_35] : memref<696x32xf32, #tpu.memory_space<vmem>>, vector<32x32xf32>
    %cst_36 = arith.constant dense<0.000000e+00> : vector<16x32xf32>
    %85 = tpu.matmul %78, %84, %cst_36 {dimension_numbers = #tpu.dot_dimension_numbers<[1], [0], [0], [1], [0, 0, 1, 1], [], []>} : vector<16x32xf32>, vector<32x32xf32>, vector<16x32xf32> -> vector<16x32xf32>
    %86 = arith.addf %83, %85 : vector<16x32xf32>
    %87 = vector.extract_strided_slice %72 {offsets = [0, 0], sizes = [1, 32], strides = [1, 1]} : vector<3x32xf32> to vector<1x32xf32>
    %88 = vector.broadcast %87 : vector<1x32xf32> to vector<16x32xf32>
    %89 = arith.addf %86, %88 : vector<16x32xf32>
    %cst_37 = arith.constant 0.000000e+00 : f32
    %90 = vector.broadcast %cst_37 : f32 to vector<16x32xf32>
    %91 = arith.maximumf %89, %90 : vector<16x32xf32>
    %c1_i32_38 = arith.constant 1 : i32
    %92 = tpu.dynamic_rotate %91 by %c1_i32_38 dim 0 : vector<16x32xf32>, i32 -> vector<16x32xf32>
    %93 = vector.broadcast %67 : vector<16x1xf32> to vector<16x32xf32>
    %94 = arith.mulf %92, %93 : vector<16x32xf32>
    %c15_i32_39 = arith.constant 15 : i32
    %95 = tpu.dynamic_rotate %91 by %c15_i32_39 dim 0 : vector<16x32xf32>, i32 -> vector<16x32xf32>
    %96 = vector.broadcast %71 : vector<16x1xf32> to vector<16x32xf32>
    %97 = arith.mulf %95, %96 : vector<16x32xf32>
    %c328 = arith.constant 328 : index
    %c0_40 = arith.constant 0 : index
    %98 = vector.load %arg2[%c328, %c0_40] : memref<696x32xf32, #tpu.memory_space<vmem>>, vector<32x32xf32>
    %cst_41 = arith.constant dense<0.000000e+00> : vector<16x32xf32>
    %99 = tpu.matmul %94, %98, %cst_41 {dimension_numbers = #tpu.dot_dimension_numbers<[1], [0], [0], [1], [0, 0, 1, 1], [], []>} : vector<16x32xf32>, vector<32x32xf32>, vector<16x32xf32> -> vector<16x32xf32>
    %c360 = arith.constant 360 : index
    %c0_42 = arith.constant 0 : index
    %100 = vector.load %arg2[%c360, %c0_42] : memref<696x32xf32, #tpu.memory_space<vmem>>, vector<32x32xf32>
    %cst_43 = arith.constant dense<0.000000e+00> : vector<16x32xf32>
    %101 = tpu.matmul %91, %100, %cst_43 {dimension_numbers = #tpu.dot_dimension_numbers<[1], [0], [0], [1], [0, 0, 1, 1], [], []>} : vector<16x32xf32>, vector<32x32xf32>, vector<16x32xf32> -> vector<16x32xf32>
    %102 = arith.addf %99, %101 : vector<16x32xf32>
    %c392 = arith.constant 392 : index
    %c0_44 = arith.constant 0 : index
    %103 = vector.load %arg2[%c392, %c0_44] : memref<696x32xf32, #tpu.memory_space<vmem>>, vector<32x32xf32>
    %cst_45 = arith.constant dense<0.000000e+00> : vector<16x32xf32>
    %104 = tpu.matmul %97, %103, %cst_45 {dimension_numbers = #tpu.dot_dimension_numbers<[1], [0], [0], [1], [0, 0, 1, 1], [], []>} : vector<16x32xf32>, vector<32x32xf32>, vector<16x32xf32> -> vector<16x32xf32>
    %105 = arith.addf %102, %104 : vector<16x32xf32>
    %106 = vector.extract_strided_slice %72 {offsets = [1, 0], sizes = [1, 32], strides = [1, 1]} : vector<3x32xf32> to vector<1x32xf32>
    %107 = vector.broadcast %106 : vector<1x32xf32> to vector<16x32xf32>
    %108 = arith.addf %105, %107 : vector<16x32xf32>
    %c424 = arith.constant 424 : index
    %c0_46 = arith.constant 0 : index
    %109 = vector.load %arg2[%c424, %c0_46] : memref<696x32xf32, #tpu.memory_space<vmem>>, vector<32x32xf32>
    %cst_47 = arith.constant dense<0.000000e+00> : vector<16x32xf32>
    %110 = tpu.matmul %60, %109, %cst_47 {dimension_numbers = #tpu.dot_dimension_numbers<[1], [0], [0], [1], [0, 0, 1, 1], [], []>} : vector<16x32xf32>, vector<32x32xf32>, vector<16x32xf32> -> vector<16x32xf32>
    %111 = vector.extract_strided_slice %72 {offsets = [2, 0], sizes = [1, 32], strides = [1, 1]} : vector<3x32xf32> to vector<1x32xf32>
    %112 = vector.broadcast %111 : vector<1x32xf32> to vector<16x32xf32>
    %113 = arith.addf %110, %112 : vector<16x32xf32>
    %114 = arith.addf %108, %113 : vector<16x32xf32>
    %cst_48 = arith.constant 0.000000e+00 : f32
    %115 = vector.broadcast %cst_48 : f32 to vector<16x32xf32>
    %116 = arith.maximumf %114, %115 : vector<16x32xf32>
    %c15_i32_49 = arith.constant 15 : i32
    %117 = tpu.dynamic_rotate %116 by %c15_i32_49 dim 0 : vector<16x32xf32>, i32 -> vector<16x32xf32>
    %118 = arith.maximumf %116, %117 : vector<16x32xf32>
    %c0_50 = arith.constant 0 : index
    %c0_51 = arith.constant 0 : index
    %119 = vector.load %arg5[%c0_50, %c0_51] : memref<16x32xf32, #tpu.memory_space<vmem>>, vector<16x32xf32>
    tpu.vector_store %arg5[%c0_50, %c0_51], %118 {strides = array<i32>} : memref<16x32xf32, #tpu.memory_space<vmem>>, vector<16x32xf32>,
    %c0_52 = arith.constant 0 : index
    %c0_53 = arith.constant 0 : index
    %120 = tpu.strided_load %arg5[%c0_52, %c0_53] {strides = array<i32: 2, 1>} : memref<16x32xf32, #tpu.memory_space<vmem>>, vector<8x32xf32>
    %121 = tpu.iota {dimensions = array<i32: 0>} : vector<8x1xi32>
    %c3_i32 = arith.constant 3 : i32
    %122 = vector.broadcast %c3_i32 : i32 to vector<8x1xi32>
    %123 = arith.andi %121, %122 : vector<8x1xi32>
    %c0_i32_54 = arith.constant 0 : i32
    %124 = vector.broadcast %c0_i32_54 : i32 to vector<8x1xi32>
    %125 = arith.cmpi ne, %123, %124 : vector<8x1xi32>
    %126 = arith.extui %125 : vector<8x1xi1> to vector<8x1xi32>
    %127 = arith.sitofp %126 : vector<8x1xi32> to vector<8x1xf32>
    %c3_i32_55 = arith.constant 3 : i32
    %128 = vector.broadcast %c3_i32_55 : i32 to vector<8x1xi32>
    %129 = arith.cmpi ne, %123, %128 : vector<8x1xi32>
    %130 = arith.extui %129 : vector<8x1xi1> to vector<8x1xi32>
    %131 = arith.sitofp %130 : vector<8x1xi32> to vector<8x1xf32>
    %c688 = arith.constant 688 : index
    %c0_56 = arith.constant 0 : index
    %132 = vector.load %arg2[%c688, %c0_56] : memref<696x32xf32, #tpu.memory_space<vmem>>, vector<3x32xf32>
    %c1_i32_57 = arith.constant 1 : i32
    %133 = tpu.dynamic_rotate %120 by %c1_i32_57 dim 0 : vector<8x32xf32>, i32 -> vector<8x32xf32>
    %134 = vector.broadcast %127 : vector<8x1xf32> to vector<8x32xf32>
    %135 = arith.mulf %133, %134 : vector<8x32xf32>
    %c7_i32_58 = arith.constant 7 : i32
    %136 = tpu.dynamic_rotate %120 by %c7_i32_58 dim 0 : vector<8x32xf32>, i32 -> vector<8x32xf32>
    %137 = vector.broadcast %131 : vector<8x1xf32> to vector<8x32xf32>
    %138 = arith.mulf %136, %137 : vector<8x32xf32>
    %c464 = arith.constant 464 : index
    %c0_59 = arith.constant 0 : index
    %139 = vector.load %arg2[%c464, %c0_59] : memref<696x32xf32, #tpu.memory_space<vmem>>, vector<32x32xf32>
    %cst_60 = arith.constant dense<0.000000e+00> : vector<8x32xf32>
    %140 = tpu.matmul %135, %139, %cst_60 {dimension_numbers = #tpu.dot_dimension_numbers<[1], [0], [0], [1], [0, 0, 1, 1], [], []>} : vector<8x32xf32>, vector<32x32xf32>, vector<8x32xf32> -> vector<8x32xf32>
    %c496 = arith.constant 496 : index
    %c0_61 = arith.constant 0 : index
    %141 = vector.load %arg2[%c496, %c0_61] : memref<696x32xf32, #tpu.memory_space<vmem>>, vector<32x32xf32>
    %cst_62 = arith.constant dense<0.000000e+00> : vector<8x32xf32>
    %142 = tpu.matmul %120, %141, %cst_62 {dimension_numbers = #tpu.dot_dimension_numbers<[1], [0], [0], [1], [0, 0, 1, 1], [], []>} : vector<8x32xf32>, vector<32x32xf32>, vector<8x32xf32> -> vector<8x32xf32>
    %143 = arith.addf %140, %142 : vector<8x32xf32>
    %c528 = arith.constant 528 : index
    %c0_63 = arith.constant 0 : index
    %144 = vector.load %arg2[%c528, %c0_63] : memref<696x32xf32, #tpu.memory_space<vmem>>, vector<32x32xf32>
    %cst_64 = arith.constant dense<0.000000e+00> : vector<8x32xf32>
    %145 = tpu.matmul %138, %144, %cst_64 {dimension_numbers = #tpu.dot_dimension_numbers<[1], [0], [0], [1], [0, 0, 1, 1], [], []>} : vector<8x32xf32>, vector<32x32xf32>, vector<8x32xf32> -> vector<8x32xf32>
    %146 = arith.addf %143, %145 : vector<8x32xf32>
    %147 = vector.extract_strided_slice %132 {offsets = [0, 0], sizes = [1, 32], strides = [1, 1]} : vector<3x32xf32> to vector<1x32xf32>
    %148 = vector.broadcast %147 : vector<1x32xf32> to vector<8x32xf32>
    %149 = arith.addf %146, %148 : vector<8x32xf32>
    %cst_65 = arith.constant 0.000000e+00 : f32
    %150 = vector.broadcast %cst_65 : f32 to vector<8x32xf32>
    %151 = arith.maximumf %149, %150 : vector<8x32xf32>
    %c1_i32_66 = arith.constant 1 : i32
    %152 = tpu.dynamic_rotate %151 by %c1_i32_66 dim 0 : vector<8x32xf32>, i32 -> vector<8x32xf32>
    %153 = vector.broadcast %127 : vector<8x1xf32> to vector<8x32xf32>
    %154 = arith.mulf %152, %153 : vector<8x32xf32>
    %c7_i32_67 = arith.constant 7 : i32
    %155 = tpu.dynamic_rotate %151 by %c7_i32_67 dim 0 : vector<8x32xf32>, i32 -> vector<8x32xf32>
    %156 = vector.broadcast %131 : vector<8x1xf32> to vector<8x32xf32>
    %157 = arith.mulf %155, %156 : vector<8x32xf32>
    %c560 = arith.constant 560 : index
    %c0_68 = arith.constant 0 : index
    %158 = vector.load %arg2[%c560, %c0_68] : memref<696x32xf32, #tpu.memory_space<vmem>>, vector<32x32xf32>
    %cst_69 = arith.constant dense<0.000000e+00> : vector<8x32xf32>
    %159 = tpu.matmul %154, %158, %cst_69 {dimension_numbers = #tpu.dot_dimension_numbers<[1], [0], [0], [1], [0, 0, 1, 1], [], []>} : vector<8x32xf32>, vector<32x32xf32>, vector<8x32xf32> -> vector<8x32xf32>
    %c592 = arith.constant 592 : index
    %c0_70 = arith.constant 0 : index
    %160 = vector.load %arg2[%c592, %c0_70] : memref<696x32xf32, #tpu.memory_space<vmem>>, vector<32x32xf32>
    %cst_71 = arith.constant dense<0.000000e+00> : vector<8x32xf32>
    %161 = tpu.matmul %151, %160, %cst_71 {dimension_numbers = #tpu.dot_dimension_numbers<[1], [0], [0], [1], [0, 0, 1, 1], [], []>} : vector<8x32xf32>, vector<32x32xf32>, vector<8x32xf32> -> vector<8x32xf32>
    %162 = arith.addf %159, %161 : vector<8x32xf32>
    %c624 = arith.constant 624 : index
    %c0_72 = arith.constant 0 : index
    %163 = vector.load %arg2[%c624, %c0_72] : memref<696x32xf32, #tpu.memory_space<vmem>>, vector<32x32xf32>
    %cst_73 = arith.constant dense<0.000000e+00> : vector<8x32xf32>
    %164 = tpu.matmul %157, %163, %cst_73 {dimension_numbers = #tpu.dot_dimension_numbers<[1], [0], [0], [1], [0, 0, 1, 1], [], []>} : vector<8x32xf32>, vector<32x32xf32>, vector<8x32xf32> -> vector<8x32xf32>
    %165 = arith.addf %162, %164 : vector<8x32xf32>
    %166 = vector.extract_strided_slice %132 {offsets = [1, 0], sizes = [1, 32], strides = [1, 1]} : vector<3x32xf32> to vector<1x32xf32>
    %167 = vector.broadcast %166 : vector<1x32xf32> to vector<8x32xf32>
    %168 = arith.addf %165, %167 : vector<8x32xf32>
    %c656 = arith.constant 656 : index
    %c0_74 = arith.constant 0 : index
    %169 = vector.load %arg2[%c656, %c0_74] : memref<696x32xf32, #tpu.memory_space<vmem>>, vector<32x32xf32>
    %cst_75 = arith.constant dense<0.000000e+00> : vector<8x32xf32>
    %170 = tpu.matmul %120, %169, %cst_75 {dimension_numbers = #tpu.dot_dimension_numbers<[1], [0], [0], [1], [0, 0, 1, 1], [], []>} : vector<8x32xf32>, vector<32x32xf32>, vector<8x32xf32> -> vector<8x32xf32>
    %171 = vector.extract_strided_slice %132 {offsets = [2, 0], sizes = [1, 32], strides = [1, 1]} : vector<3x32xf32> to vector<1x32xf32>
    %172 = vector.broadcast %171 : vector<1x32xf32> to vector<8x32xf32>
    %173 = arith.addf %170, %172 : vector<8x32xf32>
    %174 = arith.addf %168, %173 : vector<8x32xf32>
    %cst_76 = arith.constant 0.000000e+00 : f32
    %175 = vector.broadcast %cst_76 : f32 to vector<8x32xf32>
    %176 = arith.maximumf %174, %175 : vector<8x32xf32>
    %c7_i32_77 = arith.constant 7 : i32
    %177 = tpu.dynamic_rotate %176 by %c7_i32_77 dim 0 : vector<8x32xf32>, i32 -> vector<8x32xf32>
    %178 = arith.addf %176, %177 : vector<8x32xf32>
    %c6_i32 = arith.constant 6 : i32
    %179 = tpu.dynamic_rotate %178 by %c6_i32 dim 0 : vector<8x32xf32>, i32 -> vector<8x32xf32>
    %180 = arith.addf %178, %179 : vector<8x32xf32>
    %c0_78 = arith.constant 0 : index
    %c0_79 = arith.constant 0 : index
    %181 = vector.load %arg6[%c0_78, %c0_79] : memref<8x32xf32, #tpu.memory_space<vmem>>, vector<8x32xf32>
    tpu.vector_store %arg6[%c0_78, %c0_79], %180 {strides = array<i32>} : memref<8x32xf32, #tpu.memory_space<vmem>>, vector<8x32xf32>,
    %c0_80 = arith.constant 0 : index
    %c0_81 = arith.constant 0 : index
    %182 = tpu.strided_load %arg6[%c0_80, %c0_81] {strides = array<i32: 4, 1>} : memref<8x32xf32, #tpu.memory_space<vmem>>, vector<2x32xf32>
    %cst_82 = arith.constant 2.500000e-01 : f32
    %183 = vector.broadcast %cst_82 : f32 to vector<2x32xf32>
    %184 = arith.mulf %182, %183 : vector<2x32xf32>
    %c0_83 = arith.constant 0 : index
    %c0_84 = arith.constant 0 : index
    %c0_85 = arith.constant 0 : index
    %185 = vector.load %arg3[%c0_83, %c0_84, %c0_85] : memref<1x2x32xf32, #tpu.memory_space<vmem>>, vector<1x2x32xf32>
    %186 = vector.shape_cast %185 : vector<1x2x32xf32> to vector<2x32xf32>
    %187 = vector.shape_cast %184 : vector<2x32xf32> to vector<1x2x32xf32>
    tpu.vector_store %arg3[%c0_83, %c0_84, %c0_85], %187 {strides = array<i32>} : memref<1x2x32xf32, #tpu.memory_space<vmem>>, vector<1x2x32xf32>,
    return
  }
  func.func @transform_0(%arg0: i32) -> (i32, i32) {
    %c0_i32 = arith.constant 0 : i32
    %c0_i32_0 = arith.constant 0 : i32
    return %arg0, %c0_i32 : i32, i32
  }
  func.func @transform_1(%arg0: i32) -> (i32, i32) {
    %c0_i32 = arith.constant 0 : i32
    %c0_i32_0 = arith.constant 0 : i32
    %c0_i32_1 = arith.constant 0 : i32
    return %c0_i32, %c0_i32_0 : i32, i32
  }
  func.func @transform_2(%arg0: i32) -> (i32, i32, i32) {
    %c0_i32 = arith.constant 0 : i32
    %c0_i32_0 = arith.constant 0 : i32
    %c0_i32_1 = arith.constant 0 : i32
    return %arg0, %c0_i32, %c0_i32_0 : i32, i32, i32
  }
}

</mosaic_0001>

<bundles_post_ra>
// kernel: tpu_custom_call.1
= control target key start
LH: loop header
LB: loop body
LE: loop exit
PB: predicated region body
PF: predicated region fallthrough
CT: control target
= control target key end

     0   :  { %v16_v3 = vlaneseq  ;;  %vm84_vm1 = vcmask 261120   ;;  %s1563_s0 = inlined_call_operand.vmem [shape: f32[32,32], index: 0, kind: input, shape index: {}]   ;;  %s1564_s1 = inlined_call_operand.vmem [shape: f32[696,32], index: 1, kind: input, shape index: {}]   ;;  %s1565_s2 = inlined_call_operand.hbm [shape: f32[1,2,32], index: 2, kind: output, shape index: {}]  }
   0x1   :  { %v170_v0 = vld [vmem:[%s1564_s1 + $0x58] sm:$0xff]  ;;  %v169_v1 = vld [vmem:[%s1564_s1 + $0x50] sm:$0xff]  ;;  %v168_v6 = vld [vmem:[%s1564_s1 + $0x48] sm:$0xff] }
   0x2   :  { %v83_v2 = vld [vmem:[%s1564_s1 + $0x38] sm:$0xff]  ;;  %195 = vmatpush.msra.mxu2 %v170_v0  ;;  %v82_v5 = vld [vmem:[%s1564_s1 + $0x30] sm:$0xff]  ;;  %v1109_v8 = vld [vmem:[%s1563_s0] sm:$0xff]  ;;  %v1111_v9 = vshrl.u32 %v16_v3, 7 }
   0x3   :  { %109 = vmatpush.msra.mxu0 %v83_v2  ;;  %v79_v4 = vld [vmem:[%s1564_s1 + $0x18] sm:$0xff]  ;;  %v78_v7 = vld [vmem:[%s1564_s1 + $0x10] sm:$0xff]  ;;  %v1116_v10 = vld [vmem:[%s1563_s0 + $0x8] sm:$0xff]  ;;  %v63_v11 = vrot.slane %v1109_v8, 1  ;;  %v50_v14 = vrot.slane %v1109_v8, 7 }
   0x4   :  { %150 = vmatpush.msra.mxu1 %v79_v4  ;;  %196 = vmatpush.msra.mxu2 %v169_v1  ;;  %v81_v12 = vld [vmem:[%s1564_s1 + $0x28] sm:$0xff]  ;;  %v167_v15 = vld [vmem:[%s1564_s1 + $0x40] sm:$0xff]  ;;  %v64_v16 = vrot.slane %v1116_v10, 1  ;;  %vm67_vm0 = vcmp.lt.s32.totalorder %v1111_v9, 7  ;;  %v1137_v18 = vld [vmem:[%s1563_s0 + $0x18] sm:$0xff]  ;;  %v21_v19 = vand.u32 15, %v1111_v9 }
   0x5   :  { %110 = vmatpush.msra.mxu0 %v82_v5  ;;  %v77_v13 = vld [vmem:[%s1564_s1 + $0x8] sm:$0xff]  ;;  %v80_v17 = vld [vmem:[%s1564_s1 + $0x20] sm:$0xff]  ;;  %v53_v21 = vrot.slane %v1137_v18, 7  ;;  %vm54_vm2 = vcmp.lt.s32.totalorder %v1111_v9, 1  ;;  %v1148_v22 = vld [vmem:[%s1563_s0 + $0x10] sm:$0xff]  ;;  %v1151_v23 = vadd.s32 8, %v1111_v9 }
   0x6   :  { %151 = vmatpush.msra.mxu1 %v78_v7  ;;  %197 = vmatpush.msra.mxu2 %v168_v6  ;;  %v76_v20 = vld [vmem:[%s1564_s1] sm:$0xff]  ;;  %v70_v24 = vsel %vm67_vm0, %v63_v11, %v64_v16  ;;  %vm25_vm3 = vcmp.ne.s32.totalorder %v21_v19, 0  ;;  %v65_v25 = vrot.slane %v1148_v22, 1 }
   0x7   :  { %111 = vmatpush.msra.mxu0 %v81_v12 }
   0x8   :  { %152 = vmatpush.msra.mxu1 %v77_v13 }
   0x9   :  { %7 = vsyncpa [#allocation6], 0  ;;  %198 = vmatpush.msra.mxu2 %v167_v15  ;;  %112 = vmatpush.msra.mxu0 %v80_v17  ;;  %v1068_v26 = vmov 0.0   ;;  %v58_v28 = vsel %vm54_vm2, %v53_v21, %v50_v14  ;;  %v22_v29 = vand.u32 15, %v1151_v23  ;;  %v19_v31 = vadd.s32 16, %v1111_v9  ;;  %v256_v50 = vld [vmem:[%s1564_s1 + $0x98] sm:$0xff] }
   0xa   :  { %v1157_v27 = vsel %vm25_vm3, 1.0, %v1068_v26  ;;  %993 = vmatmul.msk.f32.vlgmr.msra.gmra.mxu2 %vm84_vm1, %v70_v24  ;;  %153 = vmatpush.msra.mxu1 %v76_v20  ;;  %v69_v32 = vsel %vm67_vm0, %v64_v16, %v65_v25  ;;  %v51_v34 = vrot.slane %v1116_v10, 7  ;;  %v20_v37 = vadd.s32 24, %v1111_v9  ;;  %v255_v51 = vld [vmem:[%s1564_s1 + $0x90] sm:$0xff]  ;;  %v254_v52 = vld [vmem:[%s1564_s1 + $0x88] sm:$0xff]  ;;  %v253_v53 = vld [vmem:[%s1564_s1 + $0x80] sm:$0xff] }
   0xb   :  { %v59_v30 = vmul.f32 %v1157_v27, %v58_v28  ;;  %985 = vmatmul.msk.f32.vlgmr.msra.gmra.mxu0 %vm84_vm1, %v1109_v8  ;;  %vm38_vm4 = vcmp.ne.s32.totalorder %v22_v29, 15  ;;  %v23_v36 = vand.u32 15, %v19_v31  ;;  %v52_v39 = vrot.slane %v1148_v22, 7  ;;  %281 = vmatpush.msra.mxu3 %v256_v50  ;;  %v396_v54 = vld [vmem:[%s1564_s1 + $0xd8] sm:$0xff]  ;;  %v341_v57 = vld [vmem:[%s1564_s1 + $0xb0] sm:$0xff]  ;;  %v340_v58 = vld [vmem:[%s1564_s1 + $0xa8] sm:$0xff] }
   0xc   :  { %v1171_v33 = vsel %vm38_vm4, 1.0, %v1068_v26  ;;  %v57_v38 = vsel %vm54_vm2, %v50_v14, %v51_v34  ;;  %v66_v40 = vrot.slane %v1137_v18, 1  ;;  %v24_v41 = vand.u32 15, %v20_v37  ;;  %v252_v55 = vld [vmem:[%s1564_s1 + $0x78] sm:$0xff]  ;;  %410 = vmatpush.msrb.mxu2 %v396_v54  ;;  %v395_v59 = vld [vmem:[%s1564_s1 + $0xd0] sm:$0xff]  ;;  %v339_v61 = vld [vmem:[%s1564_s1 + $0xa0] sm:$0xff] }
   0xd   :  { %989 = vmatmul.msk.f32.vlgmr.msra.gmra.mxu1 %vm84_vm1, %v59_v30  ;;  %v73_v35 = vmul.f32 %v1171_v33, %v69_v32  ;;  %vm27_vm5 = vcmp.ne.s32.totalorder %v23_v36, 0  ;;  %v56_v43 = vsel %vm54_vm2, %v51_v34, %v52_v39  ;;  %v55_v49 = vsel %vm54_vm2, %v52_v39, %v53_v21  ;;  %282 = vmatpush.msra.mxu3 %v255_v51  ;;  %v342_v56 = vld [vmem:[%s1564_s1 + $0xb8] sm:$0xff]  ;;  %v251_v60 = vld [vmem:[%s1564_s1 + $0x70] sm:$0xff]  ;;  %v394_v62 = vld [vmem:[%s1564_s1 + $0xc8] sm:$0xff]  ;;  %s972_s20 = sshll.u32 %s1565_s2, 4  ;;  %s973_s20 = int_to_ptr.hbm [resolvable:$true] %s972_s20 }
   0xe   :  { %v1185_v42 = vsel %vm27_vm5, 1.0, %v1068_v26  ;;  %v68_v44 = vsel %vm67_vm0, %v65_v25, %v66_v40  ;;  %vm40_vm6 = vcmp.ne.s32.totalorder %v24_v41, 15  ;;  %v71_v47 = vsel %vm67_vm0, %v66_v40, %v63_v11  ;;  %322 = vmatpush.msrb.mxu0 %v252_v55  ;;  %367 = vmatpush.msrb.mxu1 %v342_v56  ;;  %v250_v63 = vld [vmem:[%s1564_s1 + $0x68] sm:$0xff]  ;;  %v1253_v2 = vld [vmem:[%s1564_s1 + $0xe0] sm:$0x7] }
   0xf   :  { %v61_v45 = vmul.f32 %v1185_v42, %v56_v43  ;;  %v1196_v46 = vsel %vm40_vm6, 1.0, %v1068_v26  ;;  %283 = vmatpush.msra.mxu3 %v254_v52  ;;  %411 = vmatpush.msrb.mxu2 %v395_v59  ;;  %v216_v4 = vperm.slane %v1253_v2, 0  ;;  %v393_v5 = vld [vmem:[%s1564_s1 + $0xc0] sm:$0xff]  ;;  %vm963_vm13 = vcmask 254976  }
  0x10   :  { %v75_v48 = vmul.f32 %v1196_v46, %v71_v47  ;;  %368 = vmatpush.msrb.mxu1 %v341_v57  ;;  %323 = vmatpush.msrb.mxu0 %v251_v60  ;;  %v249_v6 = vld [vmem:[%s1564_s1 + $0x60] sm:$0xff]  ;;  %v487_v57 = vld [vmem:[%s1564_s1 + $0x118] sm:$0xff] }
  0x11   :  { %284 = vmatpush.msra.mxu3 %v253_v53  ;;  %412 = vmatpush.msrb.mxu2 %v394_v62 }
  0x12   :  { %994 = vmatmul.msk.f32.gmra.mxu2 %vm84_vm1, %v73_v35  ;;  %369 = vmatpush.msrb.mxu1 %v340_v58 }
  0x13   :  { %986 = vmatmul.msk.f32.gmra.mxu0 %vm84_vm1, %v1116_v10  ;;  %413 = vmatpush.msrb.mxu2 %v393_v5 }
  0x14   :  { %370 = vmatpush.msrb.mxu1 %v339_v61  ;;  %324 = vmatpush.msrb.mxu0 %v250_v63  ;;  %v486_v61 = vld [vmem:[%s1564_s1 + $0x110] sm:$0xff] }
  0x15   :  { %990 = vmatmul.msk.f32.gmra.mxu1 %vm84_vm1, %v57_v38 }
  0x16   :  { %325 = vmatpush.msrb.mxu0 %v249_v6 }
  0x1a   :  { %995 = vmatmul.msk.f32.gmra.mxu2 %vm84_vm1, %v68_v44 }
  0x1b   :  { %987 = vmatmul.msk.f32.gmra.mxu0 %vm84_vm1, %v1148_v22 }
  0x1d   :  { %991 = vmatmul.msk.f32.gmra.mxu1 %vm84_vm1, %v61_v45 }
  0x22   :  { %996 = vmatmul.msk.f32.gmra.mxu2 %vm84_vm1, %v75_v48 }
  0x23   :  { %988 = vmatmul.msk.f32.gmra.mxu0 %vm84_vm1, %v1137_v18 }
  0x25   :  { %992 = vmatmul.msk.f32.gmra.mxu1 %vm84_vm1, %v55_v49 }
  0x2a   :  { %1009 = vmatmul.msk.f32.vlgmr.msrb.gmra.mxu2 %vm84_vm1, %v1109_v8 }
  0x32   :  { %1010 = vmatmul.msk.f32.gmra.mxu2 %vm84_vm1, %v1116_v10 }
  0x3a   :  { %1011 = vmatmul.msk.f32.gmra.mxu2 %vm84_vm1, %v1148_v22 }
  0x42   :  { %1012 = vmatmul.msk.f32.gmra.mxu2 %vm84_vm1, %v1137_v18 }
  0x88   :  { %v114_v0 = vpop.f32.mrf.mxu0 }
  0x8a   :  { %v155_v1 = vpop.f32.mrf.mxu1 }
  0x8b   :  { %v156_v3 = vadd.f32 %v155_v1, %v114_v0  ;;  %v388_v0 = vperm.slane %v1253_v2, 1  ;;  %v397_v1 = vperm.slane %v1253_v2, 2  ;;  %v484_v2 = vld [vmem:[%s1564_s1 + $0x100] sm:$0xff] }
  0x8d   :  { %v200_v7 = vpop.f32.mrf.mxu2 }
  0x8e   :  { %v212_v11 = vadd.f32 %v200_v7, %v156_v3 }
  0x90   :  { %v217_v12 = vadd.f32 %v216_v4, %v212_v11  ;;  %v117_v13 = vpop.f32.mrf.mxu0  ;;  %v485_v11 = vld [vmem:[%s1564_s1 + $0x108] sm:$0xff] }
  0x92   :  { %v158_v14 = vpop.f32.mrf.mxu1  ;;  %v221_v15 = vmax.f32 %v217_v12, 0.0 }
  0x93   :  { %v159_v16 = vadd.f32 %v158_v14, %v117_v13  ;;  %v550_v14 = vld [vmem:[%s1564_s1 + $0x140] sm:$0xff] }
  0x94   :  { %997 = vmatmul.msk.f32.vlgmr.msra.gmra.mxu3 %vm84_vm1, %v221_v15  ;;  %v237_v29 = vrot.slane %v221_v15, 1  ;;  %v225_v45 = vrot.slane %v221_v15, 7  ;;  %v549_v15 = vld [vmem:[%s1564_s1 + $0x138] sm:$0xff]  ;;  %569 = vmatpush.msra.mxu0 %v550_v14 }
  0x95   :  { %v203_v17 = vpop.f32.mrf.mxu2 }
  0x96   :  { %v213_v19 = vadd.f32 %v203_v17, %v159_v16  ;;  %v483_v16 = vld [vmem:[%s1564_s1 + $0xf8] sm:$0xff]  ;;  %570 = vmatpush.msra.mxu0 %v549_v15 }
  0x98   :  { %v218_v20 = vadd.f32 %v216_v4, %v213_v19  ;;  %v120_v21 = vpop.f32.mrf.mxu0 }
  0x9a   :  { %v161_v24 = vpop.f32.mrf.mxu1  ;;  %v222_v25 = vmax.f32 %v218_v20, 0.0 }
  0x9b   :  { %v162_v28 = vadd.f32 %v161_v24, %v120_v21 }
  0x9c   :  { %v238_v30 = vrot.slane %v222_v25, 1  ;;  %998 = vmatmul.msk.f32.gmra.mxu3 %vm84_vm1, %v222_v25  ;;  %v226_v18 = vrot.slane %v222_v25, 7 }
  0x9d   :  { %v206_v8 = vpop.f32.mrf.mxu2 }
  0x9e   :  { %v214_v31 = vadd.f32 %v206_v8, %v162_v28  ;;  %v243_v32 = vsel %vm67_vm0, %v237_v29, %v238_v30  ;;  %v231_v54 = vsel %vm54_vm2, %v225_v45, %v226_v18 }
  0x9f   :  { %1005 = vmatmul.msk.f32.vlgmr.msrb.gmra.mxu1 %vm84_vm1, %v243_v32 }
  0xa0   :  { %v219_v10 = vadd.f32 %v216_v4, %v214_v31  ;;  %v123_v34 = vpop.f32.mrf.mxu0 }
  0xa2   :  { %v164_v35 = vpop.f32.mrf.mxu1  ;;  %v223_v36 = vmax.f32 %v219_v10, 0.0  ;;  %v548_v10 = vld [vmem:[%s1564_s1 + $0x130] sm:$0xff] }
  0xa3   :  { %v165_v37 = vadd.f32 %v164_v35, %v123_v34  ;;  %571 = vmatpush.msra.mxu0 %v548_v10  ;;  %v668_v10 = vld [vmem:[%s1564_s1 + $0x1a0] sm:$0xff] }
  0xa4   :  { %v239_v38 = vrot.slane %v223_v36, 1  ;;  %999 = vmatmul.msk.f32.gmra.mxu3 %vm84_vm1, %v223_v36  ;;  %v227_v53 = vrot.slane %v223_v36, 7 }
  0xa5   :  { %v209_v39 = vpop.f32.mrf.mxu2 }
  0xa6   :  { %v215_v40 = vadd.f32 %v209_v39, %v165_v37  ;;  %v242_v41 = vsel %vm67_vm0, %v238_v30, %v239_v38  ;;  %v481_v39 = vld [vmem:[%s1564_s1 + $0xe8] sm:$0xff] }
  0xa7   :  { %v246_v22 = vmul.f32 %v1171_v33, %v242_v41 }
  0xa8   :  { %v220_v43 = vadd.f32 %v216_v4, %v215_v40  ;;  %v547_v40 = vld [vmem:[%s1564_s1 + $0x128] sm:$0xff] }
  0xa9   :  { %1006 = vmatmul.msk.f32.gmra.mxu1 %vm84_vm1, %v246_v22  ;;  %572 = vmatpush.msra.mxu0 %v547_v40  ;;  %v1434_v40 = vld [vmem:[%s1564_s1 + $0x1c8] sm:$0x7] }
  0xaa   :  { %v224_v44 = vmax.f32 %v220_v43, 0.0 }
  0xac   :  { %v228_v47 = vrot.slane %v224_v44, 7  ;;  %1000 = vmatmul.msk.f32.gmra.mxu3 %vm84_vm1, %v224_v44  ;;  %v240_v48 = vrot.slane %v224_v44, 1 }
  0xad   :  { %v415_v58 = vpop.f32.mrf.mxu2 }
  0xae   :  { %v232_v49 = vsel %vm54_vm2, %v228_v47, %v225_v45  ;;  %v241_v51 = vsel %vm67_vm0, %v239_v38, %v240_v48  ;;  %v244_v33 = vsel %vm67_vm0, %v240_v48, %v237_v29  ;;  %v229_v56 = vsel %vm54_vm2, %v227_v53, %v228_v47  ;;  %v482_v38 = vld [vmem:[%s1564_s1 + $0xf0] sm:$0xff] }
  0xaf   :  { %v233_v50 = vmul.f32 %v1157_v27, %v232_v49  ;;  %v248_v52 = vmul.f32 %v1196_v46, %v244_v33  ;;  %v230_v27 = vsel %vm54_vm2, %v226_v18, %v227_v53  ;;  %v488_v46 = vld [vmem:[%s1564_s1 + $0x120] sm:$0xff]  ;;  %v416_v7 = vadd.f32 %v415_v58, %v397_v1  ;;  %v704_v58 = vld [vmem:[%s1564_s1 + $0x1b0] sm:$0xff] }
  0xb0   :  { %v235_v55 = vmul.f32 %v1185_v42, %v230_v27  ;;  %507 = vmatpush.msrb.mxu3 %v488_v46  ;;  %v705_v46 = vld [vmem:[%s1564_s1 + $0x1b8] sm:$0xff] }
  0xb1   :  { %1001 = vmatmul.msk.f32.vlgmr.msrb.gmra.mxu0 %vm84_vm1, %v233_v50  ;;  %1007 = vmatmul.msk.f32.gmra.mxu1 %vm84_vm1, %v241_v51 }
  0xb2   :  { %508 = vmatpush.msrb.mxu3 %v487_v57 }
  0xb4   :  { %509 = vmatpush.msrb.mxu3 %v486_v61 }
  0xb5   :  { %v418_v3 = vpop.f32.mrf.mxu2 }
  0xb6   :  { %510 = vmatpush.msrb.mxu3 %v485_v11  ;;  %v419_v20 = vadd.f32 %v418_v3, %v397_v1 }
  0xb8   :  { %536 = vmatpush.msra.mxu3 %v484_v2 }
  0xb9   :  { %1002 = vmatmul.msk.f32.gmra.mxu0 %vm84_vm1, %v231_v54  ;;  %1008 = vmatmul.msk.f32.gmra.mxu1 %vm84_vm1, %v248_v52 }
  0xba   :  { %537 = vmatpush.msra.mxu3 %v483_v16 }
  0xbc   :  { %538 = vmatpush.msra.mxu3 %v482_v38  ;;  %v665_v38 = vld [vmem:[%s1564_s1 + $0x188] sm:$0xff] }
  0xbd   :  { %v421_v24 = vpop.f32.mrf.mxu2 }
  0xbe   :  { %v422_v37 = vadd.f32 %v421_v24, %v397_v1  ;;  %539 = vmatpush.msra.mxu3 %v481_v39 }
  0xc1   :  { %1003 = vmatmul.msk.f32.gmra.mxu0 %vm84_vm1, %v235_v55  ;;  %v706_v55 = vld [vmem:[%s1564_s1 + $0x1c0] sm:$0xff] }
  0xc2   :  { %720 = vmatpush.msrb.mxu0 %v706_v55 }
  0xc4   :  { %721 = vmatpush.msrb.mxu0 %v705_v46 }
  0xc5   :  { %v424_v45 = vpop.f32.mrf.mxu2 }
  0xc6   :  { %v425_v52 = vadd.f32 %v424_v45, %v397_v1  ;;  %722 = vmatpush.msrb.mxu0 %v704_v58  ;;  %v454_v1 = vand.u32 7, %v1111_v9 }
  0xc8   :  { %vm462_vm7 = vcmp.ne.s32.totalorder %v454_v1, 7  ;;  %vm456_vm8 = vcmp.ne.s32.totalorder %v454_v1, 0  ;;  %v763_v1 = vld [vmem:[%s1564_s1 + $0x208] sm:$0xff] }
  0xc9   :  { %1004 = vmatmul.msk.f32.gmra.mxu0 %vm84_vm1, %v229_v56  ;;  %v1377_v15 = vsel %vm456_vm8, 1.0, %v1068_v26 }
 0x117   :  { %v286_v59 = vpop.f32.mrf.mxu3 }
 0x11c   :  { %v372_v42 = vpop.f32.mrf.mxu1 }
 0x11f   :  { %v289_v4 = vpop.f32.mrf.mxu3 }
 0x126   :  { %v375_v5 = vpop.f32.mrf.mxu1 }
 0x127   :  { %v292_v25 = vpop.f32.mrf.mxu3 }
 0x12e   :  { %v327_v60 = vpop.f32.mrf.mxu0  ;;  %v378_v30 = vpop.f32.mrf.mxu1 }
 0x12f   :  { %v328_v62 = vadd.f32 %v327_v60, %v286_v59  ;;  %v295_v47 = vpop.f32.mrf.mxu3  ;;  %v703_v59 = vld [vmem:[%s1564_s1 + $0x1a8] sm:$0xff] }
 0x130   :  { %723 = vmatpush.msrb.mxu0 %v703_v59 }
 0x131   :  { %v384_v63 = vadd.f32 %v372_v42, %v328_v62 }
 0x133   :  { %v389_v6 = vadd.f32 %v388_v0, %v384_v63 }
 0x135   :  { %v427_v17 = vadd.f32 %v416_v7, %v389_v6  ;;  %v1368_v7 = vsel %vm462_vm7, 1.0, %v1068_v26 }
 0x136   :  { %v330_v12 = vpop.f32.mrf.mxu0  ;;  %v381_v51 = vpop.f32.mrf.mxu1 }
 0x137   :  { %v331_v13 = vadd.f32 %v330_v12, %v289_v4  ;;  %v431_v28 = vmax.f32 %v427_v17, 0.0  ;;  %v455_v12 = vand.u32 7, %v1151_v23 }
 0x139   :  { %v385_v19 = vadd.f32 %v375_v5, %v331_v13  ;;  %v435_v34 = vrot.slane %v431_v28, 1  ;;  %vm463_vm9 = vcmp.ne.s32.totalorder %v455_v12, 7  ;;  %vm457_vm10 = vcmp.ne.s32.totalorder %v455_v12, 0  ;;  %v930_v12 = vld [vmem:[%s1564_s1 + $0x298] sm:$0xff] }
 0x13a   :  { %v1383_v23 = vsel %vm463_vm9, 1.0, %v1068_v26 }
 0x13b   :  { %v390_v21 = vadd.f32 %v388_v0, %v385_v19 }
 0x13d   :  { %v428_v29 = vadd.f32 %v419_v20, %v390_v21  ;;  %v1014_v20 = vsel %vm457_vm10, 1.0, %v1068_v26 }
 0x13e   :  { %v333_v8 = vpop.f32.mrf.mxu0 }
 0x13f   :  { %v432_v31 = vmax.f32 %v428_v29, 0.0  ;;  %v334_v32 = vadd.f32 %v333_v8, %v292_v25  ;;  %v602_v25 = vld [vmem:[%s1564_s1 + $0x160] sm:$0xff]  ;;  %v601_v29 = vld [vmem:[%s1564_s1 + $0x158] sm:$0xff]  ;;  %v604_v8 = vld [vmem:[%s1564_s1 + $0x170] sm:$0xff] }
 0x140   :  { %654 = vmatpush.msra.mxu2 %v602_v25  ;;  %v810_v25 = vld [vmem:[%s1564_s1 + $0x210] sm:$0xff] }
 0x141   :  { %v436_v35 = vrot.slane %v432_v31, 1  ;;  %v386_v36 = vadd.f32 %v378_v30, %v334_v32  ;;  %v605_v30 = vld [vmem:[%s1564_s1 + $0x178] sm:$0xff]  ;;  %v600_v32 = vld [vmem:[%s1564_s1 + $0x150] sm:$0xff] }
 0x142   :  { %655 = vmatpush.msra.mxu2 %v601_v29 }
 0x143   :  { %v441_v41 = vsel %vm67_vm0, %v435_v34, %v436_v35  ;;  %v391_v22 = vadd.f32 %v388_v0, %v386_v36 }
 0x144   :  { %v443_v43 = vmax.f32 %v431_v28, %v441_v41  ;;  %v606_v28 = vld [vmem:[%s1564_s1 + $0x180] sm:$0xff]  ;;  %656 = vmatpush.msra.mxu2 %v600_v32 }
 0x145   :  { %v429_v44 = vadd.f32 %v422_v37, %v391_v22  ;;  %625 = vmatpush.msra.mxu1 %v606_v28  ;;  %v666_v37 = vld [vmem:[%s1564_s1 + $0x190] sm:$0xff]  ;;  %v707_v28 = vperm.slane %v1434_v40, 2 }
 0x146   :  { %447 = vst.msk [vmem:[#allocation2] sm:$0xff] %vm84_vm1, %v443_v43  ;;  %v336_v48 = vpop.f32.mrf.mxu0 }
 0x147   :  { %v433_v49 = vmax.f32 %v429_v44, 0.0  ;;  %v337_v50 = vadd.f32 %v336_v48, %v295_v47  ;;  %626 = vmatpush.msra.mxu1 %v605_v30  ;;  %v582_v44 = vperm.slane %v1434_v40, 0 }
 0x149   :  { %v437_v18 = vrot.slane %v433_v49, 1  ;;  %v387_v33 = vadd.f32 %v381_v51, %v337_v50  ;;  %627 = vmatpush.msra.mxu1 %v604_v8 }
 0x14b   :  { %v440_v53 = vsel %vm67_vm0, %v436_v35, %v437_v18  ;;  %v392_v54 = vadd.f32 %v388_v0, %v387_v33  ;;  %v599_v35 = vld [vmem:[%s1564_s1 + $0x148] sm:$0xff] }
 0x14c   :  { %v444_v27 = vmax.f32 %v432_v31, %v440_v53  ;;  %v603_v31 = vld [vmem:[%s1564_s1 + $0x168] sm:$0xff]  ;;  %657 = vmatpush.msra.mxu2 %v599_v35 }
 0x14d   :  { %v430_v56 = vadd.f32 %v425_v52, %v392_v54  ;;  %628 = vmatpush.msra.mxu1 %v603_v31 }
 0x14e   :  { %448 = vst.msk [vmem:[#allocation2 + $0x8] sm:$0xff] %vm84_vm1, %v444_v27 }
 0x14f   :  { %v434_v57 = vmax.f32 %v430_v56, 0.0  ;;  %779 = vmatpush.msrb.mxu1 %v763_v1 }
 0x151   :  { %v438_v42 = vrot.slane %v434_v57, 1 }
 0x153   :  { %v439_v60 = vsel %vm67_vm0, %v437_v18, %v438_v42  ;;  %v442_v61 = vsel %vm67_vm0, %v438_v42, %v435_v34  ;;  %v667_v34 = vld [vmem:[%s1564_s1 + $0x198] sm:$0xff] }
 0x154   :  { %v445_v62 = vmax.f32 %v433_v49, %v439_v60  ;;  %v446_v63 = vmax.f32 %v434_v57, %v442_v61 }
 0x155   :  { %v451_v0 = vld [vmem:[#allocation2] ss:$2 sm:$0xff] }
 0x156   :  { %449 = vst.msk [vmem:[#allocation2 + $0x10] sm:$0xff] %vm84_vm1, %v445_v62  ;;  %1017 = vmatmul.msk.f32.vlgmr.msrb.gmra.mxu3 %vm84_vm1, %v451_v0  ;;  %v475_v4 = vrot.slane %v451_v0, 1  ;;  %v469_v11 = vrot.slane %v451_v0, 7  ;;  %v759_v62 = vld [vmem:[%s1564_s1 + $0x1e8] sm:$0xff] }
 0x157   :  { %450 = vst.msk [vmem:[#allocation2 + $0x18] sm:$0xff] %vm84_vm1, %v446_v63  ;;  %687 = vmatpush.msrb.mxu3 %v668_v10  ;;  %v813_v63 = vld [vmem:[%s1564_s1 + $0x228] sm:$0xff]  ;;  %802 = vmatpush.msrb.mxu2 %v759_v62 }
 0x159   :  { %688 = vmatpush.msrb.mxu3 %v667_v34 }
 0x15b   :  { %689 = vmatpush.msrb.mxu3 %v666_v37 }
 0x15d   :  { %690 = vmatpush.msrb.mxu3 %v665_v38 }
 0x15e   :  { %v453_v3 = vld [vmem:[#allocation2 + $0x10] ss:$2 sm:$0xff] }
 0x15f   :  { %v470_v5 = vrot.slane %v453_v3, 7  ;;  %v476_v6 = vrot.slane %v453_v3, 1  ;;  %1018 = vmatmul.msk.f32.gmra.mxu3 %vm84_vm1, %v453_v3 }
 0x161   :  { %v477_v13 = vsel %vm67_vm0, %v475_v4, %v476_v6  ;;  %v472_v14 = vsel %vm54_vm2, %v470_v5, %v469_v11  ;;  %v478_v17 = vsel %vm67_vm0, %v476_v6, %v475_v4  ;;  %v471_v21 = vsel %vm54_vm2, %v469_v11, %v470_v5  ;;  %v812_v4 = vld [vmem:[%s1564_s1 + $0x220] sm:$0xff]  ;;  %v761_v11 = vld [vmem:[%s1564_s1 + $0x1f8] sm:$0xff] }
 0x162   :  { %v479_v2 = vmul.f32 %v1368_v7, %v477_v13  ;;  %v473_v16 = vmul.f32 %v1377_v15, %v472_v14  ;;  %v480_v19 = vmul.f32 %v1383_v23, %v478_v17  ;;  %v474_v24 = vmul.f32 %v1014_v20, %v471_v21  ;;  %v762_v5 = vld [vmem:[%s1564_s1 + $0x200] sm:$0xff]  ;;  %v811_v13 = vld [vmem:[%s1564_s1 + $0x218] sm:$0xff] }
 0x163   :  { %v931_v6 = vld [vmem:[%s1564_s1 + $0x2a0] sm:$0xff]  ;;  %780 = vmatpush.msrb.mxu1 %v762_v5  ;;  %v700_v21 = vperm.slane %v1434_v40, 1 }
 0x164   :  { %1021 = vmatmul.msk.f32.vlgmr.msra.gmra.mxu0 %vm84_vm1, %v479_v2  ;;  %v760_v2 = vld [vmem:[%s1564_s1 + $0x1f0] sm:$0xff] }
 0x165   :  { %781 = vmatpush.msrb.mxu1 %v761_v11 }
 0x167   :  { %1019 = vmatmul.msk.f32.vlgmr.msra.gmra.mxu3 %vm84_vm1, %v473_v16  ;;  %782 = vmatpush.msrb.mxu1 %v760_v2 }
 0x168   :  { %829 = vmatpush.msra.mxu3 %v813_v63  ;;  %v751_v63 = vld [vmem:[%s1564_s1 + $0x2b0] sm:$0x7] }
 0x16a   :  { %830 = vmatpush.msra.mxu3 %v812_v4 }
 0x16c   :  { %1022 = vmatmul.msk.f32.gmra.mxu0 %vm84_vm1, %v480_v19  ;;  %831 = vmatpush.msra.mxu3 %v811_v13 }
 0x16e   :  { %832 = vmatpush.msra.mxu3 %v810_v25 }
 0x16f   :  { %1020 = vmatmul.msk.f32.gmra.mxu3 %vm84_vm1, %v474_v24  ;;  %v756_v24 = vld [vmem:[%s1564_s1 + $0x1d0] sm:$0xff] }
 0x174   :  { %1029 = vmatmul.msk.f32.vlgmr.msrb.gmra.mxu0 %vm84_vm1, %v451_v0  ;;  %v758_v0 = vld [vmem:[%s1564_s1 + $0x1e0] sm:$0xff] }
 0x175   :  { %803 = vmatpush.msrb.mxu2 %v758_v0 }
 0x17c   :  { %1030 = vmatmul.msk.f32.gmra.mxu0 %vm84_vm1, %v453_v3  ;;  %v932_v3 = vld [vmem:[%s1564_s1 + $0x2a8] sm:$0xff] }
 0x17d   :  { %946 = vmatpush.msra.mxu0 %v932_v3  ;;  %v838_v3 = vperm.slane %v751_v63, 0 }
 0x17f   :  { %947 = vmatpush.msra.mxu0 %v931_v6 }
 0x181   :  { %948 = vmatpush.msra.mxu0 %v930_v12 }
 0x1d9   :  { %v512_v36 = vpop.f32.mrf.mxu3 }
 0x1e1   :  { %v574_v41 = vpop.f32.mrf.mxu0 }
 0x1e2   :  { %v515_v39 = vpop.f32.mrf.mxu3 }
 0x1e9   :  { %v577_v51 = vpop.f32.mrf.mxu0 }
 0x1ea   :  { %v541_v22 = vpop.f32.mrf.mxu3 }
 0x1eb   :  { %v542_v43 = vadd.f32 %v541_v22, %v512_v36 }
 0x1ed   :  { %v580_v45 = vadd.f32 %v574_v41, %v542_v43 }
 0x1ef   :  { %v583_v47 = vadd.f32 %v582_v44, %v580_v45 }
 0x1f1   :  { %v585_v48 = vmax.f32 %v583_v47, 0.0  ;;  %v725_v16 = vpop.f32.mrf.mxu0 }
 0x1f2   :  { %v544_v49 = vpop.f32.mrf.mxu3  ;;  %v726_v31 = vadd.f32 %v725_v16, %v707_v28  ;;  %v933_v16 = vperm.slane %v751_v63, 2 }
 0x1f3   :  { %v545_v50 = vadd.f32 %v544_v49, %v515_v39  ;;  %1023 = vmatmul.msk.f32.vlgmr.msra.gmra.mxu1 %vm84_vm1, %v585_v48  ;;  %v587_v53 = vrot.slane %v585_v48, 7  ;;  %v593_v54 = vrot.slane %v585_v48, 1  ;;  %v744_v49 = vand.u32 3, %v1111_v9  ;;  %v852_v9 = vld [vmem:[%s1564_s1 + $0x268] sm:$0xff] }
 0x1f4   :  { %868 = vmatpush.msra.mxu1 %v852_v9 }
 0x1f5   :  { %v581_v18 = vadd.f32 %v577_v51, %v545_v50  ;;  %vm745_vm11 = vcmp.ne.s32.totalorder %v744_v49, 0  ;;  %vm748_vm12 = vcmp.ne.s32.totalorder %v744_v49, 3 }
 0x1f6   :  { %v1031_v51 = vsel %vm745_vm11, 1.0, %v1068_v26 }
 0x1f7   :  { %v584_v33 = vadd.f32 %v582_v44, %v581_v18  ;;  %v1032_v18 = vsel %vm748_vm12, 1.0, %v1068_v26  ;;  %v851_v26 = vld [vmem:[%s1564_s1 + $0x260] sm:$0xff] }
 0x1f8   :  { %869 = vmatpush.msra.mxu1 %v851_v26 }
 0x1f9   :  { %v586_v52 = vmax.f32 %v584_v33, 0.0  ;;  %v728_v10 = vpop.f32.mrf.mxu0 }
 0x1fa   :  { %v729_v37 = vadd.f32 %v728_v10, %v707_v28 }
 0x1fb   :  { %v588_v27 = vrot.slane %v586_v52, 7  ;;  %v594_v55 = vrot.slane %v586_v52, 1  ;;  %1024 = vmatmul.msk.f32.gmra.mxu1 %vm84_vm1, %v586_v52 }
 0x1fd   :  { %v590_v56 = vsel %vm54_vm2, %v588_v27, %v587_v53  ;;  %v595_v46 = vsel %vm67_vm0, %v593_v54, %v594_v55  ;;  %v589_v59 = vsel %vm54_vm2, %v587_v53, %v588_v27  ;;  %v596_v42 = vsel %vm67_vm0, %v594_v55, %v593_v54  ;;  %v848_v27 = vld [vmem:[%s1564_s1 + $0x248] sm:$0xff]  ;;  %v850_v55 = vld [vmem:[%s1564_s1 + $0x258] sm:$0xff] }
 0x1fe   :  { %v591_v57 = vmul.f32 %v1377_v15, %v590_v56  ;;  %v597_v58 = vmul.f32 %v1368_v7, %v595_v46  ;;  %v592_v60 = vmul.f32 %v1014_v20, %v589_v59  ;;  %v598_v61 = vmul.f32 %v1383_v23, %v596_v42  ;;  %v757_v7 = vld [vmem:[%s1564_s1 + $0x1d8] sm:$0xff]  ;;  %v929_v15 = vld [vmem:[%s1564_s1 + $0x290] sm:$0xff]  ;;  %v902_v56 = vld [vmem:[%s1564_s1 + $0x288] sm:$0xff]  ;;  %870 = vmatpush.msra.mxu1 %v850_v55 }
 0x1ff   :  { %804 = vmatpush.msrb.mxu2 %v757_v7  ;;  %949 = vmatpush.msra.mxu0 %v929_v15  ;;  %v847_v46 = vld [vmem:[%s1564_s1 + $0x240] sm:$0xff]  ;;  %v846_v59 = vld [vmem:[%s1564_s1 + $0x238] sm:$0xff] }
 0x200   :  { %1025 = vmatmul.msk.f32.vlgmr.msra.gmra.mxu2 %vm84_vm1, %v591_v57  ;;  %1027 = vmatmul.msk.f32.vlgmr.msrb.gmra.mxu3 %vm84_vm1, %v597_v58  ;;  %v849_v57 = vld [vmem:[%s1564_s1 + $0x250] sm:$0xff]  ;;  %v901_v58 = vld [vmem:[%s1564_s1 + $0x280] sm:$0xff]  ;;  %v900_v42 = vld [vmem:[%s1564_s1 + $0x278] sm:$0xff] }
 0x201   :  { %805 = vmatpush.msrb.mxu2 %v756_v24  ;;  %918 = vmatpush.msrb.mxu3 %v902_v56 }
 0x202   :  { %871 = vmatpush.msra.mxu1 %v849_v57 }
 0x203   :  { %891 = vmatpush.msra.mxu2 %v848_v27  ;;  %919 = vmatpush.msrb.mxu3 %v901_v58 }
 0x205   :  { %892 = vmatpush.msra.mxu2 %v847_v46  ;;  %920 = vmatpush.msrb.mxu3 %v900_v42 }
 0x207   :  { %893 = vmatpush.msra.mxu2 %v846_v59 }
 0x208   :  { %1026 = vmatmul.msk.f32.gmra.mxu2 %vm84_vm1, %v592_v60  ;;  %1028 = vmatmul.msk.f32.gmra.mxu3 %vm84_vm1, %v598_v61  ;;  %v845_v60 = vld [vmem:[%s1564_s1 + $0x230] sm:$0xff] }
 0x209   :  { %v899_v61 = vld [vmem:[%s1564_s1 + $0x270] sm:$0xff]  ;;  %894 = vmatpush.msra.mxu2 %v845_v60  ;;  %s1069_s1 = smov [#allocation5]  }
 0x20a   :  { %921 = vmatpush.msrb.mxu3 %v899_v61  ;;  %s970_s17 = sshll.u32 %s1069_s1, 4  ;;  %s971_s17 = int_to_ptr.vmem [resolvable:$true] %s970_s17 }
 0x270   :  { %v630_v14 = vpop.f32.mrf.mxu1 }
 0x278   :  { %v633_v30 = vpop.f32.mrf.mxu1 }
 0x283   :  { %v659_v23 = vpop.f32.mrf.mxu2  ;;  %v692_v17 = vpop.f32.mrf.mxu3 }
 0x284   :  { %v660_v19 = vadd.f32 %v659_v23, %v630_v14 }
 0x286   :  { %v698_v20 = vadd.f32 %v692_v17, %v660_v19  ;;  %v927_v17 = vperm.slane %v751_v63, 1 }
 0x288   :  { %v701_v29 = vadd.f32 %v700_v21, %v698_v20 }
 0x28a   :  { %v731_v35 = vadd.f32 %v726_v31, %v701_v29 }
 0x28b   :  { %v662_v8 = vpop.f32.mrf.mxu2  ;;  %v695_v34 = vpop.f32.mrf.mxu3 }
 0x28c   :  { %v663_v32 = vadd.f32 %v662_v8, %v633_v30  ;;  %v733_v39 = vmax.f32 %v731_v35, 0.0 }
 0x28e   :  { %v699_v36 = vadd.f32 %v695_v34, %v663_v32  ;;  %v735_v43 = vrot.slane %v733_v39, 1 }
 0x290   :  { %v702_v38 = vadd.f32 %v700_v21, %v699_v36 }
 0x292   :  { %v732_v41 = vadd.f32 %v729_v37, %v702_v38 }
 0x294   :  { %v734_v22 = vmax.f32 %v732_v41, 0.0 }
 0x296   :  { %v736_v44 = vrot.slane %v734_v22, 1 }
 0x298   :  { %v737_v45 = vsel %vm67_vm0, %v735_v43, %v736_v44  ;;  %v738_v40 = vsel %vm67_vm0, %v736_v44, %v735_v43 }
 0x299   :  { %v739_v47 = vmax.f32 %v733_v39, %v737_v45  ;;  %v740_v48 = vmax.f32 %v734_v22, %v738_v40 }
 0x29b   :  { %741 = vst.msk [vmem:[#allocation3] sm:$0xff] %vm84_vm1, %v739_v47 }
 0x29c   :  { %742 = vst.msk [vmem:[#allocation3 + $0x8] sm:$0xff] %vm84_vm1, %v740_v48 }
 0x2a3   :  { %v743_v50 = vld [vmem:[#allocation3] ss:$2 sm:$0xff] }
 0x2a4   :  { %v752_v33 = vrot.slane %v743_v50, 7  ;;  %v754_v52 = vrot.slane %v743_v50, 1  ;;  %1033 = vmatmul.msk.f32.vlgmr.msrb.gmra.mxu1 %vm84_vm1, %v743_v50  ;;  %1039 = vmatmul.msk.f32.vlgmr.msra.gmra.mxu0 %vm84_vm1, %v743_v50 }
 0x2a6   :  { %v753_v53 = vmul.f32 %v1031_v51, %v752_v33  ;;  %v755_v54 = vmul.f32 %v1032_v18, %v754_v52 }
 0x2a8   :  { %1034 = vmatmul.msk.f32.vlgmr.msrb.gmra.mxu2 %vm84_vm1, %v753_v53  ;;  %1035 = vmatmul.msk.f32.vlgmr.msra.gmra.mxu3 %vm84_vm1, %v755_v54 }
 0x321   :  { %v784_v62 = vpop.f32.mrf.mxu1  ;;  %v951_v19 = vpop.f32.mrf.mxu0 }
 0x322   :  { %v952_v24 = vadd.f32 %v951_v19, %v933_v16 }
 0x32b   :  { %v807_v0 = vpop.f32.mrf.mxu2  ;;  %v834_v4 = vpop.f32.mrf.mxu3 }
 0x32c   :  { %v808_v1 = vadd.f32 %v807_v0, %v784_v62 }
 0x32e   :  { %v837_v5 = vadd.f32 %v834_v4, %v808_v1 }
 0x330   :  { %v839_v6 = vadd.f32 %v838_v3, %v837_v5 }
 0x332   :  { %v840_v7 = vmax.f32 %v839_v6, 0.0 }
 0x334   :  { %v841_v11 = vrot.slane %v840_v7, 7  ;;  %v843_v12 = vrot.slane %v840_v7, 1  ;;  %1036 = vmatmul.msk.f32.vlgmr.msra.gmra.mxu1 %vm84_vm1, %v840_v7 }
 0x336   :  { %v842_v13 = vmul.f32 %v1031_v51, %v841_v11  ;;  %v844_v14 = vmul.f32 %v1032_v18, %v843_v12 }
 0x338   :  { %1037 = vmatmul.msk.f32.vlgmr.msra.gmra.mxu2 %vm84_vm1, %v842_v13  ;;  %1038 = vmatmul.msk.f32.vlgmr.msrb.gmra.mxu3 %vm84_vm1, %v844_v14 }
 0x3b1   :  { %v873_v2 = vpop.f32.mrf.mxu1 }
 0x3bb   :  { %v896_v15 = vpop.f32.mrf.mxu2  ;;  %v923_v20 = vpop.f32.mrf.mxu3 }
 0x3bc   :  { %v897_v23 = vadd.f32 %v896_v15, %v873_v2 }
 0x3be   :  { %v926_v21 = vadd.f32 %v923_v20, %v897_v23 }
 0x3c0   :  { %v928_v25 = vadd.f32 %v927_v17, %v926_v21 }
 0x3c2   :  { %v954_v28 = vadd.f32 %v952_v24, %v928_v25 }
 0x3c4   :  { %v955_v29 = vmax.f32 %v954_v28, 0.0 }
 0x3c6   :  { %v956_v30 = vrot.slane %v955_v29, 1 }
 0x3c8   :  { %v957_v8 = vadd.f32 %v956_v30, %v955_v29 }
 0x3ca   :  { %v958_v31 = vrot.slane %v957_v8, 2 }
 0x3cc   :  { %v959_v32 = vadd.f32 %v958_v31, %v957_v8 }
 0x3ce   :  { %960 = vst.msk [vmem:[#allocation4] sm:$0xff] %vm84_vm1, %v959_v32 }
 0x3d5   :  { %v961_v10 = vld [vmem:[#allocation4] ss:$4 sm:$0x3] }
 0x3d6   :  { %v962_v34 = vmul.f32 0.25, %v961_v10 }
 0x3d8   :  { %964 = vst.msk [vmem:[#allocation5] sm:$0x3] %vm963_vm13, %v962_v34 }
 0x3d9   :  { %975 = dma.vmem_to_hbm [thread:$0]  %s971_s17, 32, %s973_s20, [#allocation6]  }
 0x3da   :  { %1066 = dma.done.wait [#allocation6], 32  }
 0x3db   :  { %1067 = vsyncadd [#allocation6], 4294967264 }
 0x3dc   :  { %980 = vsyncpa [#allocation6], 1 }

</bundles_post_ra>
